<compile_context>
chip_gen: v5e
topology: v5e:2x2
jax: 0.10.0
libtpu: 0.0.40
codegen_flags: <defaults>
</compile_context>

<pallas_src>
import functools

import numpy as np
import jax
import jax.numpy as jnp
from jax import lax
from jax.experimental import pallas as pl
from jax.experimental.pallas import tpu as pltpu

_LANE = 128
_MAX_TILE_ROWS = 2048          # (2048, 128) f32 tile = 1 MiB per input per buffer


def _sublane_multiple(dtype) -> int:
    # f32 -> 8, bf16/fp16 -> 16, int8/fp8 -> 32 (sub-32-bit packs along sublanes)
    itemsize = jnp.dtype(dtype).itemsize
    return max(8, 32 // max(itemsize, 1))


def _round_up(x: int, m: int) -> int:
    return (x + m - 1) // m * m


def _to_lane_dense_2d(x, rows: int):
    """Flatten to 1-D, zero-pad only the lane remainder, view as (rows, 128).

    When x.size % 128 == 0 this is a pure reshape (no HBM copy)."""
    flat = x.reshape(-1)
    pad = rows * _LANE - flat.shape[0]
    if pad:
        flat = jnp.pad(flat, (0, pad))      # zeros contribute 0 to every sum
    return flat.reshape(rows, _LANE)


def _valid_row_mask(tile_rows: int, valid_rows: int):
    """(tile_rows, 128) bool mask: True where the block row is a real data row."""
    row = pl.program_id(0) * tile_rows + lax.broadcasted_iota(
        jnp.int32, (tile_rows, _LANE), 0)
    return row < valid_rows


# ----------------------------- kernels -------------------------------------

def _sq_err_sum_kernel(p_ref, t_ref, s_ref, *, tile_rows, valid_rows, ragged):
    d = p_ref[...].astype(jnp.float32) - t_ref[...].astype(jnp.float32)
    dd = d * d
    if ragged:  # zero the garbage read from the OOB tail of the last tile
        dd = jnp.where(_valid_row_mask(tile_rows, valid_rows), dd, 0.0)
    s_ref[...] = jnp.broadcast_to(jnp.sum(dd), s_ref.shape)


def _sq_err_sum_weighted_kernel(p_ref, t_ref, w_ref, s_ref, ws_ref, *,
                                tile_rows, valid_rows, ragged):
    d = p_ref[...].astype(jnp.float32) - t_ref[...].astype(jnp.float32)
    w = w_ref[...].astype(jnp.float32)
    dd = d * d * w
    if ragged:
        mask = _valid_row_mask(tile_rows, valid_rows)
        dd = jnp.where(mask, dd, 0.0)
        w = jnp.where(mask, w, 0.0)
    s_ref[...] = jnp.broadcast_to(jnp.sum(dd), s_ref.shape)
    ws_ref[...] = jnp.broadcast_to(jnp.sum(w), ws_ref.shape)


def _sq_err_none_kernel(p_ref, t_ref, o_ref, *, loss_weight):
    d = p_ref[...].astype(jnp.float32) - t_ref[...].astype(jnp.float32)
    o_ref[...] = (loss_weight * d * d).astype(o_ref.dtype)


def _sq_err_none_weighted_kernel(p_ref, t_ref, w_ref, o_ref, *, loss_weight):
    d = p_ref[...].astype(jnp.float32) - t_ref[...].astype(jnp.float32)
    w = w_ref[...].astype(jnp.float32)
    o_ref[...] = (loss_weight * d * d * w).astype(o_ref.dtype)


# ----------------------------- wrapper --------------------------------------

def mse_loss(pred, target, weight=None, loss_weight=1.0, reduction='mean'):
    """JAX/Pallas equivalent of basicsr MSELoss.forward."""
    if reduction not in ('none', 'mean', 'sum'):
        raise ValueError(f'Unsupported reduction mode: {reduction}. '
                         f"Supported ones are: ['none', 'mean', 'sum']")
    assert pred.shape == target.shape
    loss_weight = float(loss_weight)

    if weight is not None:
        # basicsr allows a 1-channel weight; broadcasting reproduces its 'mean'
        # divisor (weight.sum() * C for single-channel weights).
        # TODO(synk): the broadcast materializes in HBM; fold it into the kernel
        # if weight traffic ever matters.
        weight = jnp.broadcast_to(weight, pred.shape)

    total = int(np.prod(pred.shape))
    sub = max(_sublane_multiple(pred.dtype), _sublane_multiple(target.dtype))
    if weight is not None:
        sub = max(sub, _sublane_multiple(weight.dtype))

    rows = pl.cdiv(total, _LANE)
    num_tiles = pl.cdiv(rows, _MAX_TILE_ROWS)
    if num_tiles == 1:
        tile_rows = rows                    # one block == full array dim (always legal)
    else:
        tile_rows = _round_up(pl.cdiv(rows, num_tiles), sub)
    ragged = num_tiles * tile_rows > rows   # last block overhangs the array

    p2 = _to_lane_dense_2d(pred, rows)
    t2 = _to_lane_dense_2d(target, rows)
    w2 = None if weight is None else _to_lane_dense_2d(weight, rows)

    in_block = pl.BlockSpec((tile_rows, _LANE), lambda i: (i, 0))
    in_bytes = total * (jnp.dtype(pred.dtype).itemsize +
                        jnp.dtype(target.dtype).itemsize)
    if weight is not None:
        in_bytes += total * jnp.dtype(weight.dtype).itemsize
    cparams = pltpu.CompilerParams(dimension_semantics=("parallel",))

    if reduction == 'none':
        out_dtype = jnp.result_type(pred.dtype, target.dtype)
        kernel = (functools.partial(_sq_err_none_kernel, loss_weight=loss_weight)
                  if weight is None else
                  functools.partial(_sq_err_none_weighted_kernel, loss_weight=loss_weight))
        ins = (p2, t2) if weight is None else (p2, t2, w2)
        out2 = pl.pallas_call(
            kernel,
            out_shape=jax.ShapeDtypeStruct((rows, _LANE), out_dtype),
            grid=(num_tiles,),
            in_specs=[in_block] * len(ins),
            out_specs=pl.BlockSpec((tile_rows, _LANE), lambda i: (i, 0)),
            compiler_params=cparams,
            cost_estimate=pl.CostEstimate(
                flops=4 * total, transcendentals=0,
                bytes_accessed=in_bytes + total * jnp.dtype(out_dtype).itemsize),
        )(*ins)
        return out2.reshape(-1)[:total].reshape(pred.shape)

    # 'mean' / 'sum': per-tile partial sums, reduced over tiles in plain JAX.
    partial_shape = jax.ShapeDtypeStruct((num_tiles, 8, _LANE), jnp.float32)
    partial_spec = pl.BlockSpec((1, 8, _LANE), lambda i: (i, 0, 0))
    red_kwargs = dict(tile_rows=tile_rows, valid_rows=rows, ragged=ragged)

    if weight is None:
        partials = pl.pallas_call(
            functools.partial(_sq_err_sum_kernel, **red_kwargs),
            out_shape=partial_shape,
            grid=(num_tiles,),
            in_specs=[in_block, in_block],
            out_specs=partial_spec,
            compiler_params=cparams,
            cost_estimate=pl.CostEstimate(
                flops=3 * total, transcendentals=0,
                bytes_accessed=in_bytes + num_tiles * 8 * _LANE * 4),
        )(p2, t2)
        sq_sum = jnp.sum(partials[:, 0, 0])
        if reduction == 'sum':
            return loss_weight * sq_sum
        return loss_weight * sq_sum / total                      # 'mean'

    partials, w_partials = pl.pallas_call(
        functools.partial(_sq_err_sum_weighted_kernel, **red_kwargs),
        out_shape=(partial_shape, partial_shape),
        grid=(num_tiles,),
        in_specs=[in_block, in_block, in_block],
        out_specs=(partial_spec, partial_spec),
        compiler_params=cparams,
        cost_estimate=pl.CostEstimate(
            flops=5 * total, transcendentals=0,
            bytes_accessed=in_bytes + 2 * num_tiles * 8 * _LANE * 4),
    )(p2, t2, w2)
    sq_sum = jnp.sum(partials[:, 0, 0])
    if reduction == 'sum':
        return loss_weight * sq_sum
    w_sum = jnp.sum(w_partials[:, 0, 0])                         # basicsr 'mean' divisor
    return loss_weight * sq_sum / w_sum


class MSELoss:
    """MSE (L2) loss — Pallas-backed equivalent of basicsr MSELoss."""

    def __init__(self, loss_weight=1.0, reduction='mean'):
        if reduction not in ('none', 'mean', 'sum'):
            raise ValueError(f'Unsupported reduction mode: {reduction}. '
                             f"Supported ones are: ['none', 'mean', 'sum']")
        self.loss_weight = loss_weight
        self.reduction = reduction

    def __call__(self, pred, target, weight=None, **kwargs):
        return mse_loss(pred, target, weight=weight,
                        loss_weight=self.loss_weight, reduction=self.reduction)


if __name__ == "__main__":
    key = jax.random.PRNGKey(0)
    k1, k2, k3 = jax.random.split(key, 3)
    pred = jax.random.uniform(k1, (2, 4, 16, 16), dtype=jnp.float32)
    target = jax.random.uniform(k2, (2, 4, 16, 16), dtype=jnp.float32)
    weight = jax.random.uniform(k3, (2, 1, 16, 16), dtype=jnp.float32)

    # reduction='mean' (default)
    loss_mean = MSELoss(loss_weight=1.0, reduction='mean')(pred, target)
    ref_mean = jnp.mean((pred - target) ** 2)
    assert jnp.allclose(loss_mean, ref_mean, rtol=1e-5, atol=1e-6), (loss_mean, ref_mean)

    # reduction='sum'
    loss_sum = MSELoss(loss_weight=0.5, reduction='sum')(pred, target)
    ref_sum = 0.5 * jnp.sum((pred - target) ** 2)
    assert jnp.allclose(loss_sum, ref_sum, rtol=1e-5, atol=1e-5), (loss_sum, ref_sum)

    # reduction='none'
    loss_none = MSELoss(loss_weight=2.0, reduction='none')(pred, target)
    ref_none = 2.0 * (pred - target) ** 2
    assert loss_none.shape == pred.shape
    assert jnp.allclose(loss_none, ref_none, rtol=1e-5, atol=1e-6)

    # element-wise weight, reduction='mean' (basicsr divides by broadcast weight sum)
    loss_w = MSELoss(loss_weight=1.0, reduction='mean')(pred, target, weight=weight)
    wb = jnp.broadcast_to(weight, pred.shape)
    ref_w = jnp.sum((pred - target) ** 2 * wb) / jnp.sum(wb)
    assert jnp.allclose(loss_w, ref_w, rtol=1e-5, atol=1e-6), (loss_w, ref_w)

    # bf16 inputs (sub-32-bit sublane packing; f32 accumulation in-kernel)
    pred_bf = pred.astype(jnp.bfloat16)
    target_bf = target.astype(jnp.bfloat16)
    loss_bf = MSELoss(loss_weight=1.0, reduction='mean')(pred_bf, target_bf)
    ref_bf = jnp.mean((pred_bf.astype(jnp.float32) - target_bf.astype(jnp.float32)) ** 2)
    assert jnp.allclose(loss_bf, ref_bf, rtol=1e-2, atol=1e-3), (loss_bf, ref_bf)

    # awkward (non-128-divisible, ragged-tile) shape: exercises the multi-tile
    # grid with a partially out-of-bounds last block and in-kernel masking.
    k4, k5 = jax.random.split(k3)
    pred_r = jax.random.uniform(k4, (2, 3, 255, 255), dtype=jnp.float32)
    target_r = jax.random.uniform(k5, (2, 3, 255, 255), dtype=jnp.float32)
    r_mean = MSELoss(1.0, 'mean')(pred_r, target_r)
    r_sum = MSELoss(1.0, 'sum')(pred_r, target_r)
    r_none = MSELoss(1.0, 'none')(pred_r, target_r)
    ref_r = (pred_r - target_r) ** 2
    assert jnp.allclose(r_mean, jnp.mean(ref_r), rtol=1e-4, atol=1e-6), (r_mean, jnp.mean(ref_r))
    assert jnp.allclose(r_sum, jnp.sum(ref_r), rtol=1e-4, atol=1e-3), (r_sum, jnp.sum(ref_r))
    assert r_none.shape == pred_r.shape
    assert jnp.allclose(r_none, ref_r, rtol=1e-5, atol=1e-6)

    jax.block_until_ready((loss_mean, loss_sum, loss_none, loss_w, loss_bf,
                           r_mean, r_sum, r_none))
    print("KERNEL_OK")
</pallas_src>

<mosaic_0001>
module attributes {stable_mosaic.version = 11 : i64} {
  func.func @_sq_err_sum_kernel(%arg0: i32, %arg1: memref<16x128xf32, #tpu.memory_space<vmem>>, %arg2: memref<16x128xf32, #tpu.memory_space<vmem>>, %arg3: memref<1x8x128xf32, #tpu.memory_space<vmem>>) attributes {dimension_semantics = [#tpu.dimension_semantics<parallel>], iteration_bounds = array<i64: 1>, scalar_prefetch = 0 : i64, scratch_operands = 0 : i64, tpu.core_type = #tpu.core_type<tc>, window_params = [{transform_indices = @transform_0, window_bounds = array<i64: 16, 128>}, {transform_indices = @transform_1, window_bounds = array<i64: 16, 128>}, {transform_indices = @transform_2, window_bounds = array<i64: 1, 8, 128>}]} {
    %c0 = arith.constant 0 : index
    %c0_0 = arith.constant 0 : index
    %0 = vector.load %arg1[%c0, %c0_0] : memref<16x128xf32, #tpu.memory_space<vmem>>, vector<16x128xf32>
    %c0_1 = arith.constant 0 : index
    %c0_2 = arith.constant 0 : index
    %1 = vector.load %arg2[%c0_1, %c0_2] : memref<16x128xf32, #tpu.memory_space<vmem>>, vector<16x128xf32>
    %2 = arith.subf %0, %1 : vector<16x128xf32>
    %3 = arith.mulf %2, %2 : vector<16x128xf32>
    %4 = vector.shape_cast %3 : vector<16x128xf32> to vector<1x16x128xf32>
    %cst = arith.constant dense<0.000000e+00> : vector<1xf32>
    %5 = vector.multi_reduction <add>, %4, %cst [1, 2] : vector<1x16x128xf32> to vector<1xf32>
    %6 = vector.shape_cast %5 : vector<1xf32> to vector<1x1x1xf32>
    %7 = vector.extract %6[0, 0, 0] : f32 from vector<1x1x1xf32>
    %8 = vector.broadcast %7 : f32 to vector<1x8x128xf32>
    %c0_3 = arith.constant 0 : index
    %c0_4 = arith.constant 0 : index
    %c0_5 = arith.constant 0 : index
    %9 = vector.load %arg3[%c0_3, %c0_4, %c0_5] : memref<1x8x128xf32, #tpu.memory_space<vmem>>, vector<1x8x128xf32>
    tpu.vector_store %arg3[%c0_3, %c0_4, %c0_5], %8 {strides = array<i32>} : memref<1x8x128xf32, #tpu.memory_space<vmem>>, vector<1x8x128xf32>,
    return
  }
  func.func @transform_0(%arg0: i32) -> (i32, i32) {
    %c0_i32 = arith.constant 0 : i32
    %c0_i32_0 = arith.constant 0 : i32
    return %arg0, %c0_i32 : i32, i32
  }
  func.func @transform_1(%arg0: i32) -> (i32, i32) {
    %c0_i32 = arith.constant 0 : i32
    %c0_i32_0 = arith.constant 0 : i32
    return %arg0, %c0_i32 : i32, i32
  }
  func.func @transform_2(%arg0: i32) -> (i32, i32, i32) {
    %c0_i32 = arith.constant 0 : i32
    %c0_i32_0 = arith.constant 0 : i32
    %c0_i32_1 = arith.constant 0 : i32
    return %arg0, %c0_i32, %c0_i32_0 : i32, i32, i32
  }
}

</mosaic_0001>

<bundles_post_ra>
// kernel: tpu_custom_call.1
= control target key start
LH: loop header
LB: loop body
LE: loop exit
PB: predicated region body
PF: predicated region fallthrough
CT: control target
= control target key end

     0   :  { %7 = vsyncpa [#allocation3], 0  ;;  %s196_s0 = inlined_call_operand.hbm [shape: f32[16,128], index: 0, kind: input, shape index: {}]   ;;  %s197_s1 = inlined_call_operand.hbm [shape: f32[16,128], index: 1, kind: input, shape index: {}]   ;;  %s198_s2 = inlined_call_operand.hbm [shape: f32[1,8,128], index: 2, kind: output, shape index: {}]  }
   0x1   :  { %8 = vsyncpa [#allocation6], 0 }
   0x2   :  { %9 = vsyncpa [#allocation4], 0  ;;  %s14_s11 = sshll.u32 %s196_s0, 4  ;;  %s167_s12 = smov [#allocation2]   ;;  %s15_s11 = int_to_ptr.hbm [resolvable:$true] %s14_s11 }
   0x3   :  { %s16_s13 = sshll.u32 %s167_s12, 4  ;;  %s27_s16 = sshll.u32 %s197_s1, 4  ;;  %s17_s13 = int_to_ptr.vmem [resolvable:$true] %s16_s13  ;;  %s28_s16 = int_to_ptr.hbm [resolvable:$true] %s27_s16 }
   0x4   :  { %s168_s17 = smov 128   ;;  %s169_s18 = smov 8  }
   0x5   :  { %22 = dma.hbm_to_vmem [thread:$0]  %s15_s11, 256, %s17_s13, [#allocation3], %s168_s17, %s168_s17, %s169_s18  }
   0x6   :  { %s170_s19 = smov [#allocation5]  }
   0x7   :  { %s29_s20 = sshll.u32 %s170_s19, 4  ;;  %s30_s20 = int_to_ptr.vmem [resolvable:$true] %s29_s20 }
   0x8   :  { %35 = dma.hbm_to_vmem [thread:$0]  %s28_s16, 256, %s30_s20, [#allocation6], %s168_s17, %s168_s17, %s169_s18  }
   0x9   :  { %161 = dma.done.wait [#allocation3], 256  }
   0xa   :  { %162 = vsyncadd [#allocation3], 4294967040 }
   0xb   :  { %163 = dma.done.wait [#allocation6], 256  }
   0xc   :  { %164 = vsyncadd [#allocation6], 4294967040  ;;  %v44_v0 = vld [vmem:[#allocation2] sm:$0xff]  ;;  %v45_v1 = vld [vmem:[#allocation2 + $0x8] sm:$0xff]  ;;  %s171_s0 = smov [#allocation7]   ;;  %s71_s23 = sshll.u32 %s198_s2, 4  ;;  %s72_s23 = int_to_ptr.hbm [resolvable:$true] %s71_s23 }
   0xd   :  { %v46_v2 = vld [vmem:[#allocation5] sm:$0xff]  ;;  %v47_v3 = vld [vmem:[#allocation5 + $0x8] sm:$0xff]  ;;  %s69_s1 = sshll.u32 %s171_s0, 4  ;;  %s70_s1 = int_to_ptr.vmem [resolvable:$true] %s69_s1 }
   0xe   :  { %v48_v4 = vsub.f32 %v44_v0, %v46_v2  ;;  %v49_v5 = vsub.f32 %v45_v1, %v47_v3 }
  0x10   :  { %v50_v6 = vmul.f32 %v48_v4, %v48_v4  ;;  %v51_v7 = vmul.f32 %v49_v5, %v49_v5 }
  0x12   :  { %v52_v8 = vadd.f32 %v51_v7, %v50_v6 }
  0x14   :  { %53 = vadd.xlane.f32.xlu0 %v52_v8 }
  0x87   :  { %v54_v9 = vpop.xlane.xlu0 %53 }
  0x88   :  { %v55_v10 = vrot.slane %v54_v9, 4 }
  0x8a   :  { %v56_v11 = vadd.f32 %v55_v10, %v54_v9 }
  0x8c   :  { %v57_v12 = vrot.slane %v56_v11, 2 }
  0x8e   :  { %v58_v13 = vadd.f32 %v57_v12, %v56_v11 }
  0x90   :  { %v59_v14 = vrot.slane %v58_v13, 1 }
  0x92   :  { %v60_v15 = vadd.f32 %v59_v14, %v58_v13 }
  0x94   :  { %82 = vpush %v60_v15 }
  0xc5   :  { %s83_s24 = spop %82 }
  0xc6   :  { %v62_v16 = vstv %s83_s24 }
  0xc7   :  { %63 = vst [vmem:[#allocation7] sm:$0xff] %v62_v16 }
  0xc8   :  { %74 = dma.vmem_to_hbm [thread:$0]  %s70_s1, 128, %s72_s23, [#allocation4]  }
  0xc9   :  { %165 = dma.done.wait [#allocation4], 128  }
  0xca   :  { %166 = vsyncadd [#allocation4], 4294967168 }
  0xcb   :  { %79 = vsyncpa [#allocation3], 1 }
  0xcc   :  { %80 = vsyncpa [#allocation6], 1 }
  0xcd   :  { %81 = vsyncpa [#allocation4], 1 }

</bundles_post_ra>
